<compile_context>
chip_gen: v5e
topology: v5e:2x2
jax: 0.10.0
libtpu: 0.0.40
codegen_flags: <defaults>
</compile_context>

<pallas_src>
import math

import jax
import jax.numpy as jnp
from jax import lax
from jax.experimental import pallas as pl
from jax.experimental.pallas import tpu as pltpu


def _sdpa_flash_kernel(q_ref, kv_ref, o_ref, m_sc, l_sc, acc_sc):
    # q_ref:  (1, tq, D)   kv_ref: (1, tk, D)   o_ref: (1, tq, D)
    # m_sc/l_sc: (tq, 1) f32   acc_sc: (tq, D) f32
    ki = pl.program_id(2)

    @pl.when(ki == 0)
    def _init():
        m_sc[...] = jnp.full(m_sc.shape, -jnp.inf, dtype=m_sc.dtype)
        l_sc[...] = jnp.zeros(l_sc.shape, dtype=l_sc.dtype)
        acc_sc[...] = jnp.zeros(acc_sc.shape, dtype=acc_sc.dtype)

    d = q_ref.shape[-1]
    scale = 1.0 / math.sqrt(d)

    # Fold the softmax scale into the (small) q tile — keeps operand dtype.
    q = (q_ref[0] * scale).astype(q_ref.dtype)          # (tq, D)
    k = kv_ref[0]                                       # (tk, D)

    # s = q @ k^T  — contract last dims of both operands (no explicit x.T),
    # accumulate in f32 on the MXU.
    s = lax.dot_general(
        q, k, (((1,), (1,)), ((), ())),
        preferred_element_type=jnp.float32)              # (tq, tk) f32

    # Online (streaming) softmax update, all statistics in f32.
    m_prev = m_sc[...]                                   # (tq, 1)
    m_new = jnp.maximum(m_prev, jnp.max(s, axis=-1, keepdims=True))
    alpha = jnp.exp(m_prev - m_new)                      # (tq, 1)
    p = jnp.exp(s - m_new)                               # (tq, tk) f32

    l_sc[...] = alpha * l_sc[...] + jnp.sum(p, axis=-1, keepdims=True)
    acc_sc[...] = alpha * acc_sc[...] + jnp.dot(
        p.astype(kv_ref.dtype), kv_ref[0],
        preferred_element_type=jnp.float32)              # (tq, D) f32
    m_sc[...] = m_new

    @pl.when(ki == pl.num_programs(2) - 1)
    def _finalize():
        # Exact f32 divide: runs once per q-tile on a (tq, 1) vector, so it is
        # negligible but avoids the ~1e-2 error of the approximate reciprocal.
        o_ref[0] = (acc_sc[...] / l_sc[...]).astype(o_ref.dtype)


def _pick_tile(s: int, target: int) -> int:
    """Largest tile <= target that divides s and is a multiple of 8 (else s)."""
    if s <= target:
        return s
    t = target
    while t >= 8:
        if s % t == 0 and t % 8 == 0:
            return t
        t //= 2
    return s


def scaled_dot_prod_attention(x: jax.Array, *, tq: int | None = None,
                              tk: int | None = None) -> jax.Array:
    """x: (B, S, D) -> softmax(x x^T / sqrt(D)) x, shape (B, S, D)."""
    B, S, D = x.shape
    # Tile targets: fill the 256-wide MXU on v6e/v7x while keeping the working
    # set (q tile + double-buffered kv tile + f32 acc/scores) well under v7x's
    # 64 MiB VMEM even for D up to 128 in f32.
    tq = _pick_tile(S, 256) if tq is None else tq
    tk = _pick_tile(S, 512) if tk is None else tk
    grid = (B, S // tq, S // tk)

    return pl.pallas_call(
        _sdpa_flash_kernel,
        out_shape=jax.ShapeDtypeStruct((B, S, D), x.dtype),
        grid_spec=pltpu.PrefetchScalarGridSpec(
            num_scalar_prefetch=0,
            grid=grid,
            in_specs=[
                # q tile: fixed over the kv axis.
                pl.BlockSpec((1, tq, D), lambda b, qi, ki: (b, qi, 0)),
                # kv tile: the hot inner DMA stream (used as both K and V).
                pl.BlockSpec((1, tk, D), lambda b, qi, ki: (b, ki, 0)),
            ],
            out_specs=pl.BlockSpec((1, tq, D), lambda b, qi, ki: (b, qi, 0)),
            scratch_shapes=[
                pltpu.VMEM((tq, 1), jnp.float32),   # running max
                pltpu.VMEM((tq, 1), jnp.float32),   # running sum
                pltpu.VMEM((tq, D), jnp.float32),   # output accumulator
            ],
        ),
        compiler_params=pltpu.CompilerParams(
            # batch + query tiles parallel (megacore), kv axis is a reduction.
            dimension_semantics=("parallel", "parallel", "arbitrary"),
            # Headroom-safe across v5e/v6e (128 MiB) and v7x (64 MiB) VMEM.
            vmem_limit_bytes=48 * 1024 * 1024,
        ),
    )(x, x)


def _reference(x):
    xf = x.astype(jnp.float32)
    s = jnp.einsum("bqd,bkd->bqk", xf, xf) / jnp.sqrt(jnp.float32(x.shape[-1]))
    p = jax.nn.softmax(s, axis=-1)
    return jnp.einsum("bqk,bkd->bqd", p, xf).astype(x.dtype)


if __name__ == "__main__":
    key = jax.random.PRNGKey(0)
    B, S, D = 2, 8, 32
    x = jax.random.normal(key, (B, S, D), dtype=jnp.float32)

    out = scaled_dot_prod_attention(x)
    out = jax.block_until_ready(out)

    ref = _reference(x)
    assert out.shape == (B, S, D)
    err = float(jnp.max(jnp.abs(out - ref)))
    assert jnp.allclose(out, ref, atol=2e-5, rtol=2e-5), err

    print("KERNEL_OK")
</pallas_src>

<mosaic_0001>
module attributes {stable_mosaic.version = 11 : i64} {
  func.func @_sdpa_flash_kernel(%arg0: i32, %arg1: i32, %arg2: i32, %arg3: memref<1x8x32xf32, #tpu.memory_space<vmem>>, %arg4: memref<1x8x32xf32, #tpu.memory_space<vmem>>, %arg5: memref<1x8x32xf32, #tpu.memory_space<vmem>>, %arg6: memref<8x1xf32, #tpu.memory_space<vmem>>, %arg7: memref<8x1xf32, #tpu.memory_space<vmem>>, %arg8: memref<8x32xf32, #tpu.memory_space<vmem>>) attributes {dimension_semantics = [#tpu.dimension_semantics<parallel>, #tpu.dimension_semantics<parallel>, #tpu.dimension_semantics<arbitrary>], iteration_bounds = array<i64: 2, 1, 1>, scalar_prefetch = 0 : i64, scratch_operands = 3 : i64, tpu.core_type = #tpu.core_type<tc>, window_params = [{transform_indices = @transform_0, window_bounds = array<i64: 1, 8, 32>}, {transform_indices = @transform_1, window_bounds = array<i64: 1, 8, 32>}, {transform_indices = @transform_2, window_bounds = array<i64: 1, 8, 32>}]} {
    %c0_i32 = arith.constant 0 : i32
    %0 = arith.cmpi eq, %arg2, %c0_i32 : i32
    %1 = arith.extui %0 : i1 to i32
    %c0_i32_0 = arith.constant 0 : i32
    %2 = arith.cmpi ne, %1, %c0_i32_0 : i32
    scf.if %2 {
      %cst_27 = arith.constant 0xFF800000 : f32
      %37 = vector.broadcast %cst_27 : f32 to vector<8x1xf32>
      %c0_28 = arith.constant 0 : index
      %c0_29 = arith.constant 0 : index
      %38 = vector.load %arg6[%c0_28, %c0_29] : memref<8x1xf32, #tpu.memory_space<vmem>>, vector<8x1xf32>
      tpu.vector_store %arg6[%c0_28, %c0_29], %37 {strides = array<i32>} : memref<8x1xf32, #tpu.memory_space<vmem>>, vector<8x1xf32>,
      %cst_30 = arith.constant 0.000000e+00 : f32
      %39 = vector.broadcast %cst_30 : f32 to vector<8x1xf32>
      %c0_31 = arith.constant 0 : index
      %c0_32 = arith.constant 0 : index
      %40 = vector.load %arg7[%c0_31, %c0_32] : memref<8x1xf32, #tpu.memory_space<vmem>>, vector<8x1xf32>
      tpu.vector_store %arg7[%c0_31, %c0_32], %39 {strides = array<i32>} : memref<8x1xf32, #tpu.memory_space<vmem>>, vector<8x1xf32>,
      %cst_33 = arith.constant 0.000000e+00 : f32
      %41 = vector.broadcast %cst_33 : f32 to vector<8x32xf32>
      %c0_34 = arith.constant 0 : index
      %c0_35 = arith.constant 0 : index
      %42 = vector.load %arg8[%c0_34, %c0_35] : memref<8x32xf32, #tpu.memory_space<vmem>>, vector<8x32xf32>
      tpu.vector_store %arg8[%c0_34, %c0_35], %41 {strides = array<i32>} : memref<8x32xf32, #tpu.memory_space<vmem>>, vector<8x32xf32>,
    } else {
    }
    %c0 = arith.constant 0 : index
    %c0_1 = arith.constant 0 : index
    %c0_2 = arith.constant 0 : index
    %3 = vector.load %arg3[%c0, %c0_1, %c0_2] : memref<1x8x32xf32, #tpu.memory_space<vmem>>, vector<1x8x32xf32>
    %4 = vector.shape_cast %3 : vector<1x8x32xf32> to vector<8x32xf32>
    %cst = arith.constant 0.176776692 : f32
    %5 = vector.broadcast %cst : f32 to vector<8x32xf32>
    %6 = arith.mulf %4, %5 : vector<8x32xf32>
    %c0_3 = arith.constant 0 : index
    %c0_4 = arith.constant 0 : index
    %c0_5 = arith.constant 0 : index
    %7 = vector.load %arg4[%c0_3, %c0_4, %c0_5] : memref<1x8x32xf32, #tpu.memory_space<vmem>>, vector<1x8x32xf32>
    %8 = vector.shape_cast %7 : vector<1x8x32xf32> to vector<8x32xf32>
    %cst_6 = arith.constant dense<0.000000e+00> : vector<8x8xf32>
    %9 = tpu.matmul %6, %8, %cst_6 {dimension_numbers = #tpu.dot_dimension_numbers<[1], [1], [0], [0], [0, 0, 1, 0], [], []>} : vector<8x32xf32>, vector<8x32xf32>, vector<8x8xf32> -> vector<8x8xf32>
    %c0_7 = arith.constant 0 : index
    %c0_8 = arith.constant 0 : index
    %10 = vector.load %arg6[%c0_7, %c0_8] : memref<8x1xf32, #tpu.memory_space<vmem>>, vector<8x1xf32>
    %cst_9 = arith.constant dense<0xFF800000> : vector<8xf32>
    %11 = vector.multi_reduction <maximumf>, %9, %cst_9 [1] : vector<8x8xf32> to vector<8xf32>
    %12 = vector.shape_cast %11 : vector<8xf32> to vector<8x1xf32>
    %13 = arith.maximumf %10, %12 : vector<8x1xf32>
    %14 = arith.subf %10, %13 : vector<8x1xf32>
    %15 = math.exp %14 : vector<8x1xf32>
    %16 = vector.broadcast %13 : vector<8x1xf32> to vector<8x8xf32>
    %17 = arith.subf %9, %16 : vector<8x8xf32>
    %18 = math.exp %17 : vector<8x8xf32>
    %c0_10 = arith.constant 0 : index
    %c0_11 = arith.constant 0 : index
    %19 = vector.load %arg7[%c0_10, %c0_11] : memref<8x1xf32, #tpu.memory_space<vmem>>, vector<8x1xf32>
    %20 = arith.mulf %15, %19 : vector<8x1xf32>
    %cst_12 = arith.constant dense<0.000000e+00> : vector<8xf32>
    %21 = vector.multi_reduction <add>, %18, %cst_12 [1] : vector<8x8xf32> to vector<8xf32>
    %22 = vector.shape_cast %21 : vector<8xf32> to vector<8x1xf32>
    %23 = arith.addf %20, %22 : vector<8x1xf32>
    %c0_13 = arith.constant 0 : index
    %c0_14 = arith.constant 0 : index
    %24 = vector.load %arg7[%c0_13, %c0_14] : memref<8x1xf32, #tpu.memory_space<vmem>>, vector<8x1xf32>
    tpu.vector_store %arg7[%c0_13, %c0_14], %23 {strides = array<i32>} : memref<8x1xf32, #tpu.memory_space<vmem>>, vector<8x1xf32>,
    %c0_15 = arith.constant 0 : index
    %c0_16 = arith.constant 0 : index
    %25 = vector.load %arg8[%c0_15, %c0_16] : memref<8x32xf32, #tpu.memory_space<vmem>>, vector<8x32xf32>
    %26 = vector.broadcast %15 : vector<8x1xf32> to vector<8x32xf32>
    %27 = arith.mulf %26, %25 : vector<8x32xf32>
    %c0_17 = arith.constant 0 : index
    %c0_18 = arith.constant 0 : index
    %c0_19 = arith.constant 0 : index
    %28 = vector.load %arg4[%c0_17, %c0_18, %c0_19] : memref<1x8x32xf32, #tpu.memory_space<vmem>>, vector<1x8x32xf32>
    %29 = vector.shape_cast %28 : vector<1x8x32xf32> to vector<8x32xf32>
    %cst_20 = arith.constant dense<0.000000e+00> : vector<8x32xf32>
    %30 = tpu.matmul %18, %29, %cst_20 {dimension_numbers = #tpu.dot_dimension_numbers<[1], [0], [0], [1], [0, 0, 1, 1], [], []>} : vector<8x8xf32>, vector<8x32xf32>, vector<8x32xf32> -> vector<8x32xf32>
    %31 = arith.addf %27, %30 : vector<8x32xf32>
    %c0_21 = arith.constant 0 : index
    %c0_22 = arith.constant 0 : index
    %32 = vector.load %arg8[%c0_21, %c0_22] : memref<8x32xf32, #tpu.memory_space<vmem>>, vector<8x32xf32>
    tpu.vector_store %arg8[%c0_21, %c0_22], %31 {strides = array<i32>} : memref<8x32xf32, #tpu.memory_space<vmem>>, vector<8x32xf32>,
    %c0_23 = arith.constant 0 : index
    %c0_24 = arith.constant 0 : index
    %33 = vector.load %arg6[%c0_23, %c0_24] : memref<8x1xf32, #tpu.memory_space<vmem>>, vector<8x1xf32>
    tpu.vector_store %arg6[%c0_23, %c0_24], %13 {strides = array<i32>} : memref<8x1xf32, #tpu.memory_space<vmem>>, vector<8x1xf32>,
    %c0_i32_25 = arith.constant 0 : i32
    %34 = arith.cmpi eq, %arg2, %c0_i32_25 : i32
    %35 = arith.extui %34 : i1 to i32
    %c0_i32_26 = arith.constant 0 : i32
    %36 = arith.cmpi ne, %35, %c0_i32_26 : i32
    scf.if %36 {
      %c0_27 = arith.constant 0 : index
      %c0_28 = arith.constant 0 : index
      %37 = vector.load %arg8[%c0_27, %c0_28] : memref<8x32xf32, #tpu.memory_space<vmem>>, vector<8x32xf32>
      %c0_29 = arith.constant 0 : index
      %c0_30 = arith.constant 0 : index
      %38 = vector.load %arg7[%c0_29, %c0_30] : memref<8x1xf32, #tpu.memory_space<vmem>>, vector<8x1xf32>
      %39 = vector.broadcast %38 : vector<8x1xf32> to vector<8x32xf32>
      %40 = arith.divf %37, %39 : vector<8x32xf32>
      %c0_31 = arith.constant 0 : index
      %c0_32 = arith.constant 0 : index
      %c0_33 = arith.constant 0 : index
      %41 = vector.load %arg5[%c0_31, %c0_32, %c0_33] : memref<1x8x32xf32, #tpu.memory_space<vmem>>, vector<1x8x32xf32>
      %42 = vector.shape_cast %41 : vector<1x8x32xf32> to vector<8x32xf32>
      %43 = vector.shape_cast %40 : vector<8x32xf32> to vector<1x8x32xf32>
      tpu.vector_store %arg5[%c0_31, %c0_32, %c0_33], %43 {strides = array<i32>} : memref<1x8x32xf32, #tpu.memory_space<vmem>>, vector<1x8x32xf32>,
    } else {
    }
    return
  }
  func.func @transform_0(%arg0: i32, %arg1: i32, %arg2: i32) -> (i32, i32, i32) {
    %c0_i32 = arith.constant 0 : i32
    %c0_i32_0 = arith.constant 0 : i32
    return %arg0, %arg1, %c0_i32 : i32, i32, i32
  }
  func.func @transform_1(%arg0: i32, %arg1: i32, %arg2: i32) -> (i32, i32, i32) {
    %c0_i32 = arith.constant 0 : i32
    %c0_i32_0 = arith.constant 0 : i32
    return %arg0, %arg2, %c0_i32 : i32, i32, i32
  }
  func.func @transform_2(%arg0: i32, %arg1: i32, %arg2: i32) -> (i32, i32, i32) {
    %c0_i32 = arith.constant 0 : i32
    %c0_i32_0 = arith.constant 0 : i32
    return %arg0, %arg1, %c0_i32 : i32, i32, i32
  }
}

</mosaic_0001>

<bundles_post_ra>
// kernel: tpu_custom_call.1
= control target key start
LH: loop header
LB: loop body
LE: loop exit
PB: predicated region body
PF: predicated region fallthrough
CT: control target
= control target key end

     0   :  { %7 = vsyncpa [#allocation6], 0  ;;  %s884_s0 = inlined_call_operand.hbm [shape: f32[2,8,32], index: 0, kind: input, shape index: {}]   ;;  %s885_s1 = inlined_call_operand.hbm [shape: f32[2,8,32], index: 1, kind: input, shape index: {}]   ;;  %s886_s2 = inlined_call_operand.hbm [shape: f32[2,8,32], index: 2, kind: output, shape index: {}]  }
   0x1   :  { %9 = vsyncpa [#allocation6 + $0x1], 0 }
   0x2   :  { %10 = vsyncpa [#allocation9], 0 }
   0x3   :  { %12 = vsyncpa [#allocation9 + $0x1], 0 }
   0x4   :  { %13 = vsyncpa [#allocation7], 0 }
   0x5   :  { %15 = vsyncpa [#allocation7 + $0x1], 0  ;;  %s739_s9 = smov 0   ;;  %s741_s10 = smov 0  }
   0x6   :  { %s743_s11 = smov 0   ;;  %s745_s12 = smov 0  }
   0x7   :  { %s747_s13 = smov 0   ;;  %s749_s14 = smov 0  }
   0x8 LB: > { %s475_s15 = sadd.s32 4294967295, %s719_s14   ;;  %s476_s16 = sadd.s32 4294967294, %s719_s14   ;;  %s719_s14 = sphi %s749_s14, %s21_s14   ;;  %s715_s13 = sphi %s747_s13, %s895_s13   ;;  %s711_s12 = sphi %s745_s12, %s894_s12   ;;  %s707_s11 = sphi %s743_s11, %s893_s11   ;;  %s703_s10 = sphi %s741_s10, %s892_s10   ;;  %s699_s9 = sphi %s739_s9, %s891_s9  }
   0x9   : > { %s40_s17 = sadd.s32 1, %s715_s13  ;;  %s49_s18 = sadd.s32 1, %s707_s11 }
   0xa   : > { %p42_p0 = scmp.ge.s32.totalorder %s40_s17, 2  ;;  %p56_p1 = scmp.ne.s32.totalorder %s707_s11, %s703_s10 }
   0xb   : > { %p57_p2 = scmp.eq.s32.totalorder %s719_s14, 0  ;;  %p62_p3 = scmp.ne.s32.totalorder %s703_s10, %s699_s9 }
   0xc   : > { %s897_s17 = smov (%p42_p0, %s40_s17), 0  ;;  %p63_p5 = scmp.eq.s32.totalorder %s475_s15, 0 }
   0xd   : > { %p780_p4 = por %p57_p2, %p56_p1  ;;  %s44_s20 = ssub.s32 %s715_s13, %s897_s17 }
   0xe   : > { %p116_p6 = scmp.eq.s32.totalorder %s475_s15, 1  ;;  %p47_p7 = scmp.eq.s32.totalorder %s44_s20, 0 }
   0xf   : > { %p786_p8 = por %p63_p5, %p62_p3  ;;  %p122_p10 = scmp.eq.s32.totalorder %s476_s16, 1 }
  0x10   : > { %p790_p9 = por %p116_p6, %p56_p1  ;;  %p478_p12 = scmp.ge.s32.totalorder %s719_s14, 2 }
  0x11   : > { %s795_s23 = scalar_select %p47_p7, %s707_s11, %s49_s18  }
  0x12   : > { %p797_p11 = por %p122_p10, %p62_p3  ;;  %p511_p13 = scmp.lt.s32.totalorder %s719_s14, 2 }
  0x13   : > { %s142_s25 = sand.u32 1, %s707_s11   ;;  %s480_s27 = sshll.u32 %s715_s13, 3 }
  0x14   : > { %s479_s26 = sshll.u32 %s142_s25, 3  ;;  %s151_s30 = scalar_lea.hbm %s884_s0, %s480_s27 }
  0x15   : > { %s146_s3 = scalar_lea.vmem [#allocation5], %s479_s26  ;;  %s153_s5 = sshll.u32 %s151_s30, 4  ;;  %s154_s5 = int_to_ptr.hbm [resolvable:$true] %s153_s5 }
  0x16   : > { %s155_s4 = sshll.u32 %s146_s3, 4  ;;  %p501_p0 = pnand %p511_p13, %p780_p4  ;;  %s156_s4 = int_to_ptr.vmem [resolvable:$true] %s155_s4 }
  0x17   : > { %p483_p1 = scmp.ge.s32.totalorder %s719_s14, 1  ;;  %p180_p2 = scmp.lt.s32.totalorder %s719_s14, 3 }
  0x18   : > { %s143_s6 = scalar_lea.sflag [#allocation6], %s142_s25  ;;  %s171_s15 = scalar_lea.hbm %s885_s1, %s480_s27 }
  0x19   : > { %503 = dma.hbm_to_vmem [thread:$0]  (!%p501_p0), %s154_s5, 128, %s156_s4, %s143_s6  }
  0x1a   : > { %p181_p3 = pnand %p483_p1, %p180_p2  ;;  %s166_s16 = scalar_lea.vmem [#allocation8], %s479_s26 }
  0x1b   : > { %s175_s18 = sshll.u32 %s166_s16, 4  ;;  %s173_s20 = sshll.u32 %s171_s15, 4  ;;  %s176_s18 = int_to_ptr.vmem [resolvable:$true] %s175_s18  ;;  %s174_s20 = int_to_ptr.hbm [resolvable:$true] %s173_s20 }
  0x1c   : > { %s163_s28 = scalar_lea.sflag [#allocation9], %s142_s25  ;;  %184 = sbr.rel (%p181_p3) target bundleno = 675 (0x2a3), region = 28 }
  0x1d   : > { %506 = dma.hbm_to_vmem [thread:$0]  (!%p501_p0), %s174_s20, 128, %s176_s18, %s163_s28  }
  0x1e   : > { %s816_s19 = sand.u32 (!%p181_p3), 1, %s703_s10  }
  0x1f   : > { %s819_s29 = sshll.u32 (!%p181_p3), %s816_s19, 3  ;;  %s187_s30 = scalar_lea.sflag (!%p181_p3), [#allocation6], %s816_s19 }
  0x20   : > { %s190_s3 = scalar_lea.vmem (!%p181_p3), [#allocation5], %s819_s29 }
  0x21   : > { %686 = dma.done.wait (%p786_p8), %s187_s30, 128  }
  0x22   : > { %688 = vsyncadd (%p786_p8), %s187_s30, 4294967168  ;;  %s197_s25 = scalar_lea.sflag [#allocation9], %s816_s19  ;;  %s200_s26 = scalar_lea.vmem [#allocation8], %s819_s29 }
  0x23   : > { %690 = dma.done.wait (%p786_p8), %s197_s25, 128  }
  0x24   : > { %692 = vsyncadd (%p786_p8), %s197_s25, 4294967168  ;;  %vm234_vm0 = vcmask 261120   ;;  %v721_v0 = vmov 0.0   ;;  %v238_v1 = vld [vmem:[%s200_s26] sm:$0xff]  ;;  %v236_v2 = vld [vmem:[%s190_s3] sm:$0xff]  ;;  %vm231_vm1 = vcmask 7168  }
  0x25   : > { %235 = vst.msk [vmem:[#allocation4] sm:$0xff] %vm234_vm0, %v721_v0  ;;  %487 = vmatpush.xpose.msk.msra.mxu0 %vm234_vm0, %v238_v1  ;;  %v237_v3 = vmul.f32 0.17677669, %v236_v2  ;;  %317 = vmatpush.msra.mxu1 %v238_v1  ;;  %v722_v4 = vmov -inf   ;;  %vm267_vm2 = vcmask 64512   ;;  %v723_v7 = vmov 0  }
  0x26   : > { %232 = vst.msk [vmem:[#allocation2] sm:$0xff] %vm231_vm1, %v722_v4  ;;  %564 = vset.pattern.permute.xlu0 %v723_v7  ;;  %566 = vset.pattern.permute.xlu2 %v723_v7  ;;  %s491_s21 = sshll.u32 %s711_s12, 3  ;;  %s226_s6 = scalar_lea.vmem [#allocation10], %s819_s29 }
  0x27   : > { %233 = vst.msk [vmem:[#allocation3] sm:$0xff] %vm231_vm1, %v721_v0  ;;  %565 = vset.pattern.permute.xlu1 %v723_v7  ;;  %s363_s5 = scalar_lea.hbm %s886_s2, %s491_s21  ;;  %s365_s7 = sshll.u32 %s226_s6, 4  ;;  %s366_s7 = int_to_ptr.vmem [resolvable:$true] %s365_s7 }
  0x28   : > { %488 = vmatmul.msk.f32.vlgmr.msra.gmra.mxu0 %vm234_vm0, %v237_v3  ;;  %s367_s8 = sshll.u32 %s363_s5, 4  ;;  %s352_s12 = scalar_lea.sflag [#allocation7], %s816_s19  ;;  %s368_s8 = int_to_ptr.hbm [resolvable:$true] %s367_s8 }
  0x29   : > { %s647_s15 = sshra.s32 %s368_s8, 4  ;;  %s653_s28 = scalar_lea.hbm %s886_s2, 16  ;;  %s648_s15 = int_to_ptr.hbm [resolvable:$true] %s647_s15 }
  0x2a   : > { %s649_s16 = scalar_lea.hbm %s648_s15, 8  ;;  %p654_p7 = scmp.lt.s32.totalorder %s648_s15, %s886_s2 }
  0x2b   : > { %p650_p4 = scmp.ne.s32.totalorder %s648_s15, %s649_s16  ;;  %p655_p8 = scmp.lt.s32.totalorder %s653_s28, %s649_s16 }
  0x2c   : > { %v291_v23 = vld [vmem:[#allocation4] sm:$0xff] }
  0x2d   : > { %v266_v8 = vld [vmem:[#allocation2] sm:$0xff]  ;;  %p651_p5 = pnand %p650_p4, %p790_p9  ;;  %p656_p10 = por %p655_p8, %p654_p7 }
  0x2e   : > { %v283_v19 = vld [vmem:[#allocation3] sm:$0xff] }
  0x2f   : > { %p652_p6 = pneg %p651_p5 }
  0x31   : > { %p657_p13 = pnand %p656_p10, %p652_p6 }
  0xa5   : > { %v263_v5 = vpop.f32.mrf.mxu0 }
  0xa6   : > { %v268_v6 = vsel %vm267_vm2, %v263_v5, -inf }
  0xa7   : > { %269 = vmax.xlane.f32.xlu0 %v268_v6 }
 0x11a   : > { %v270_v9 = vpop.xlane.xlu0 %269 }
 0x11b   : > { %v271_v10 = vmax.f32 %v266_v8, %v270_v9 }
 0x11d   : > { %v272_v11 = vsub.f32 %v266_v8, %v271_v10  ;;  %324 = vst.msk [vmem:[#allocation2] sm:$0xff] %vm231_vm1, %v271_v10  ;;  %277 = vperm.xlu0 %564, %v271_v10  }
 0x11f   : > { %v273_v12 = vmul.f32 1.442695, %v272_v11 }
 0x121   : > { %567 = vpow2.f32 %v273_v12 }
 0x127   : > { %v568_v13 = vpop.eup %567 }
 0x128   : > { %294 = vperm.xlu2 %566, %v568_v13   ;;  %v284_v20 = vmul.f32 %v568_v13, %v283_v19 }
 0x182   : > { %v295_v24 = vpop.permute.xlu2 %294 }
 0x183   : > { %v297_v25 = vmul.f32 %v295_v24, %v291_v23 }
 0x18f   : > { %v278_v14 = vpop.permute.xlu0 %277 }
 0x190   : > { %v280_v15 = vsub.f32 %v263_v5, %v278_v14 }
 0x192   : > { %v281_v16 = vmul.f32 1.442695, %v280_v15 }
 0x194   : > { %569 = vpow2.f32 %v281_v16 }
 0x19a   : > { %v570_v17 = vpop.eup %569 }
 0x19b   : > { %489 = vmatmul.msk.f32.vlgmr.msra.gmra.mxu1 %vm267_vm2, %v570_v17  ;;  %v285_v18 = vsel %vm267_vm2, %v570_v17, 0.0 }
 0x19c   : > { %286 = vadd.xlane.f32.xlu1 %v285_v18 }
 0x20f   : > { %v287_v21 = vpop.xlane.xlu1 %286 }
 0x210   : > { %v288_v22 = vadd.f32 %v287_v21, %v284_v20 }
 0x212   : > { %290 = vst.msk [vmem:[#allocation3] sm:$0xff] %vm231_vm1, %v288_v22 }
 0x218   : > { %v319_v26 = vpop.f32.mrf.mxu1 }
 0x219   : > { %v322_v27 = vadd.f32 %v319_v26, %v297_v25  ;;  %v329_v28 = vld [vmem:[#allocation3] sm:$0xff] }
 0x21a   : > { %332 = vperm.xlu1 %565, %v329_v28  }
 0x21b   : > { %323 = vst.msk [vmem:[#allocation4] sm:$0xff] %vm234_vm0, %v322_v27 }
 0x222   : > { %v328_v39 = vld [vmem:[#allocation4] sm:$0xff] }
 0x28c   : > { %v333_v29 = vpop.permute.xlu1 %332 }
 0x28d   : > { %571 = vrcp.f32 %v333_v29  ;;  %v346_v33 = vand.u32 2147483648, %v333_v29  ;;  %v344_v35 = vand.u32 2147483647, %v333_v29  ;;  %vm340_vm4 = vweird.f32 %v333_v29 }
 0x28f   : > { %v347_v37 = vor.u32 1.1754944e-38, %v346_v33  ;;  %vm345_vm6 = vcmp.eq.f32.partialorder %v344_v35, 8.507059e+37 }
 0x293   : > { %v572_v30 = vpop.eup %571 }
 0x294   : > { %v336_v31 = vmul.f32 %v572_v30, %v333_v29  ;;  %vm341_vm3 = vweird.f32 %v572_v30 }
 0x295   : > { %vm342_vm5 = vmor %vm340_vm4, %vm341_vm3 }
 0x296   : > { %v337_v32 = vsub.f32 1.0, %v336_v31 }
 0x298   : > { %v338_v34 = vmul.f32 %v572_v30, %v337_v32 }
 0x29a   : > { %v339_v36 = vadd.f32 %v572_v30, %v338_v34 }
 0x29c   : > { %v343_v38 = vsel %vm342_vm5, %v572_v30, %v339_v36 }
 0x29d   : > { %v348_v40 = vsel %vm345_vm6, %v347_v37, %v343_v38 }
 0x29e   : > { %v349_v41 = vmul.f32 %v348_v40, %v328_v39 }
 0x2a0   : > { %350 = vst.msk [vmem:[%s226_s6] sm:$0xff] %vm234_vm0, %v349_v41 }
 0x2a1   : > { %660 = shalt.err (!%p657_p13)
}
 0x2a2   : > { %498 = dma.vmem_to_hbm [thread:$0]  (%p790_p9), %s366_s7, 128, %s368_s8, %s352_s12  }
 0x2a3 PF: > { %s379_s19 = sand.u32 1, %s699_s9   ;;  %p508_p0 = pnand %p478_p12, %p797_p11 }
 0x2a4   : > { %s380_s3 = scalar_lea.sflag [#allocation7], %s379_s19 }
 0x2a5   : > { %p509_p1 = pneg %p508_p0 }
 0x2a7   : > { %694 = dma.done.wait (%p509_p1), %s380_s3, 128  }
 0x2a8   : > { %696 = vsyncadd (%p509_p1), %s380_s3, 4294967168  ;;  %s21_s14 = sadd.s32 1, %s719_s14   ;;  %s891_s9 = smov %s703_s10 }
 0x2a9   : > { %p18_p2 = scmp.ge.s32.totalorder %s21_s14, 4   ;;  %s892_s10 = smov %s707_s11 }
 0x2aa   : > { %s893_s11 = smov %s795_s23  ;;  %s894_s12 = smov %s715_s13 }
 0x2ab   : > { %s895_s13 = smov %s897_s17  ;;  %20 = sbr.rel (!%p18_p2) target bundleno = 8 (0x8), region = 94 }
 0x2b0   :  { %386 = vsyncpa [#allocation6], 1 }
 0x2b1   :  { %388 = vsyncpa [#allocation6 + $0x1], 1 }
 0x2b2   :  { %389 = vsyncpa [#allocation9], 1 }
 0x2b3   :  { %391 = vsyncpa [#allocation9 + $0x1], 1 }
 0x2b4   :  { %392 = vsyncpa [#allocation7], 1 }
 0x2b5   :  { %394 = vsyncpa [#allocation7 + $0x1], 1 }

</bundles_post_ra>
